<compile_context>
chip_gen: v6e
topology: v6e:2x2x1
jax: 0.10.0
libtpu: 0.0.40
codegen_flags: <defaults>
</compile_context>

<pallas_src>
import math
import functools

import jax
import jax.numpy as jnp
from jax import lax
from jax.experimental import pallas as pl
from jax.experimental.pallas import tpu as pltpu

# Scoped-VMEM budget for both kernels: leaves headroom under v7x's 64 MiB/TC physical
# VMEM and is comfortably under v5e/v6e's 128 MiB physical.
_VMEM_LIMIT_BYTES = 48 * 1024 * 1024


def _pick_tile(dim, candidates):
    """Largest candidate tile that evenly divides `dim`, else the full dim."""
    for c in candidates:
        if dim % c == 0:
            return c
    return dim


# ---------------------------------------------------------------------------
# Tiled linear kernel:  y = x @ W + b   (W stored pre-transposed: (Din, Dout))
# ---------------------------------------------------------------------------

def _linear_kernel(x_ref, w_ref, b_ref, o_ref, acc_ref, *, compute_dtype):
    # x: (tm, tk), w: (tk, tn), b: (1, tn), o: (tm, tn), acc: f32 (tm, tn)
    @pl.when(pl.program_id(2) == 0)
    def _():
        acc_ref[...] = jnp.zeros_like(acc_ref)

    x = x_ref[...].astype(compute_dtype)   # no-op cast if already compute_dtype
    w = w_ref[...].astype(compute_dtype)
    acc_ref[...] += jnp.dot(x, w, preferred_element_type=jnp.float32)

    # Bias applied once, at writeback only (not per k-step).
    @pl.when(pl.program_id(2) == pl.num_programs(2) - 1)
    def _():
        o_ref[...] = (acc_ref[...] + b_ref[...].astype(jnp.float32)).astype(o_ref.dtype)


def pallas_linear(x, w, b, *, out_dtype=None, compute_dtype=None):
    """y = x @ W + b over the last axis of x.

    W is stored (d_in, d_out) — i.e. torch's nn.Linear weight already transposed —
    so the MXU gets a canonical (m,k)x(k,n) feed with the output dim lane-dense.
    out_dtype: storage dtype of the result (default: x.dtype).
    compute_dtype: matmul operand dtype (e.g. jnp.bfloat16); accumulation stays f32.
    """
    size = x.shape
    d_in, d_out = w.shape
    if out_dtype is None:
        out_dtype = x.dtype
    if compute_dtype is None:
        compute_dtype = x.dtype

    x2 = x.reshape(-1, d_in)
    m_orig = x2.shape[0]
    m = m_orig

    tm = _pick_tile(m, (256, 128))
    if tm == m and m > 256:
        # Large, non-divisible row count: pad to MXU-friendly 256-row tiles instead of
        # one giant block (or tiny tiles) that would blow the scoped VMEM limit / MXU fill.
        tm = 256
        pad = (-m) % tm
        x2 = jnp.pad(x2, ((0, pad), (0, 0)))
        m = m + pad

    tn = _pick_tile(d_out, (512, 256, 128))   # lane (output) dim: big multiple of 128
    tk = _pick_tile(d_in, (512, 256, 128))    # contraction tile

    grid = (m // tm, d_out // tn, d_in // tk)
    kernel = functools.partial(_linear_kernel, compute_dtype=compute_dtype)

    out = pl.pallas_call(
        kernel,
        out_shape=jax.ShapeDtypeStruct((m, d_out), out_dtype),
        grid_spec=pltpu.PrefetchScalarGridSpec(
            num_scalar_prefetch=0,
            grid=grid,
            in_specs=[
                pl.BlockSpec((tm, tk), lambda i, j, k: (i, k)),
                pl.BlockSpec((tk, tn), lambda i, j, k: (k, j)),
                pl.BlockSpec((1, tn), lambda i, j, k: (0, j)),
            ],
            out_specs=pl.BlockSpec((tm, tn), lambda i, j, k: (i, j)),
            scratch_shapes=[pltpu.VMEM((tm, tn), jnp.float32)],
        ),
        compiler_params=pltpu.CompilerParams(
            dimension_semantics=("parallel", "parallel", "arbitrary"),
            vmem_limit_bytes=_VMEM_LIMIT_BYTES),
    )(x2, w, b.reshape(1, d_out))

    if m != m_orig:
        out = out[:m_orig]
    return out.reshape(*size[:-1], d_out)


# ---------------------------------------------------------------------------
# Fused multi-head flash attention kernel.
# Grid = (B, Tq tiles, Tk chunks); the KV axis is innermost/"arbitrary" with running
# max / sum / unnormalized-output accumulators in VMEM scratch (online softmax).
# Heads are contiguous column strips of D, so no external split/merge transposes.
# ---------------------------------------------------------------------------

def _mha_flash_kernel(q_ref, k_ref, v_ref, o_ref, m_sc, l_sc, acc_sc,
                      *, n_heads, inv_scale):
    # q: (1, tq, D); k/v: (1, tkc, D); o: (1, tq, D)
    # m_sc/l_sc: (n_heads, tq, 1) f32 running max / running sum
    # acc_sc: (tq, D) f32 unnormalized output accumulator (heads = column strips)
    ki = pl.program_id(2)

    @pl.when(ki == 0)
    def _():
        m_sc[...] = jnp.full(m_sc.shape, -jnp.inf, m_sc.dtype)
        l_sc[...] = jnp.zeros(l_sc.shape, l_sc.dtype)
        acc_sc[...] = jnp.zeros(acc_sc.shape, acc_sc.dtype)

    q = q_ref[0]
    k = k_ref[0]
    v = v_ref[0]
    d = q.shape[-1]
    dh = d // n_heads

    # NOTE: per-head column strips are lane-tile aligned only when dh % 128 == 0;
    # smaller dh still runs correctly but uses masked lane slices.
    for h in range(n_heads):
        lo, hi = h * dh, (h + 1) * dh
        # Fold 1/scale into the (tq, dh) Q strip — Tk/dh fewer VALU multiplies than
        # scaling the (tq, tkc) logits.
        qh = q[:, lo:hi] * inv_scale
        s = lax.dot_general(
            qh, k[:, lo:hi],
            dimension_numbers=(((1,), (1,)), ((), ())),
            preferred_element_type=jnp.float32)            # (tq, tkc) f32 logits

        m_prev = m_sc[h]                                   # (tq, 1)
        m_new = jnp.maximum(m_prev, jnp.max(s, axis=-1, keepdims=True))
        alpha = jnp.exp(m_prev - m_new)                    # rescale factor, (tq, 1)
        # Exp stays f32 for accuracy on all generations.
        # TODO(synk): bf16 exp on v6e/v7x (EUP is the saturated slot for small dh).
        p = jnp.exp(s - m_new)                             # (tq, tkc) f32

        l_sc[h] = alpha * l_sc[h] + jnp.sum(p, axis=-1, keepdims=True)
        pv = lax.dot_general(
            p.astype(v.dtype), v[:, lo:hi],
            dimension_numbers=(((1,), (0,)), ((), ())),
            preferred_element_type=jnp.float32)            # (tq, dh) f32
        acc_sc[:, lo:hi] = alpha * acc_sc[:, lo:hi] + pv
        m_sc[h] = m_new

    @pl.when(ki == pl.num_programs(2) - 1)
    def _():
        # Deferred softmax normalization on the small (tq, dh) accumulators (exact
        # divide: cheap here and keeps tight parity with the reference), then a single
        # lane-dense (tq, D) store — already the merged-head layout.
        for h in range(n_heads):
            lo, hi = h * dh, (h + 1) * dh
            acc_sc[:, lo:hi] = acc_sc[:, lo:hi] / l_sc[h]
        o_ref[0] = acc_sc[...].astype(o_ref.dtype)


def pallas_mha_attention(q, k, v, n_heads, scale):
    """q: (B, Tq, D), k/v: (B, Tk, D) -> (B, Tq, D) (heads fused, merged layout)."""
    b, tq_full, d = q.shape
    _, tk_full, _ = k.shape
    assert d % n_heads == 0, "d_model must be divisible by n_heads"

    tq = _pick_tile(tq_full, (256, 128))
    tkc = _pick_tile(tk_full, (512, 256, 128))
    # TODO(synk): pad + mask Tq/Tk when they do not divide by a tile so very long,
    # non-divisible sequences don't fall back to a single full-length block.

    grid = (b, tq_full // tq, tk_full // tkc)
    kernel = functools.partial(_mha_flash_kernel, n_heads=n_heads,
                               inv_scale=1.0 / scale)

    return pl.pallas_call(
        kernel,
        out_shape=jax.ShapeDtypeStruct((b, tq_full, d), q.dtype),
        grid_spec=pltpu.PrefetchScalarGridSpec(
            num_scalar_prefetch=0,
            grid=grid,
            in_specs=[
                pl.BlockSpec((1, tq, d), lambda bi, qi, ki: (bi, qi, 0)),
                pl.BlockSpec((1, tkc, d), lambda bi, qi, ki: (bi, ki, 0)),
                pl.BlockSpec((1, tkc, d), lambda bi, qi, ki: (bi, ki, 0)),
            ],
            out_specs=pl.BlockSpec((1, tq, d), lambda bi, qi, ki: (bi, qi, 0)),
            scratch_shapes=[
                pltpu.VMEM((n_heads, tq, 1), jnp.float32),   # running max
                pltpu.VMEM((n_heads, tq, 1), jnp.float32),   # running sum
                pltpu.VMEM((tq, d), jnp.float32),            # unnormalized output
            ],
        ),
        compiler_params=pltpu.CompilerParams(
            dimension_semantics=("parallel", "parallel", "arbitrary"),
            vmem_limit_bytes=_VMEM_LIMIT_BYTES),
    )(q, k, v)


# ---------------------------------------------------------------------------
# MultiHead2 forward (hot paths in Pallas; no XLA transposes between calls)
# ---------------------------------------------------------------------------

def multihead2_forward(params, query, key, value, n_heads, *, compute_dtype=None):
    """Reproduces MultiHead2.forward with mask=None, weights=None, causal/diag=False,
    dropout inactive (eval / drop_ratio=0), use_wo=True.

    compute_dtype=jnp.bfloat16 stores q/k/v and the attention output in bf16 with f32
    accumulation; the final wo output keeps the input dtype.
    """
    act_dtype = compute_dtype if compute_dtype is not None else query.dtype

    # TODO(synk): for self-attention (query is key is value), fuse wq/wk/wv into one
    # pre-concatenated (Din, 3D) projection, and optionally fuse wo into the attention
    # epilogue with the weight resident in VMEM.
    q = pallas_linear(query, params["wq_w"], params["wq_b"],
                      out_dtype=act_dtype, compute_dtype=compute_dtype)
    k = pallas_linear(key, params["wk_w"], params["wk_b"],
                      out_dtype=act_dtype, compute_dtype=compute_dtype)
    v = pallas_linear(value, params["wv_w"], params["wv_b"],
                      out_dtype=act_dtype, compute_dtype=compute_dtype)

    D = q.shape[-1]
    scale = math.sqrt(D)  # Attention(d_key=D) -> scale = sqrt(D), NOT sqrt(D // N)

    out = pallas_mha_attention(q, k, v, n_heads, scale)

    # use_wo=True path; final output keeps the caller's dtype.
    return pallas_linear(out, params["wo_w"], params["wo_b"],
                         out_dtype=query.dtype, compute_dtype=compute_dtype)


def init_params(rng, d_key, d_value):
    """Matches the custom Linear: weight ~ U(-1/sqrt(d_in), 1/sqrt(d_in)), bias = 0.
    Weights are stored pre-transposed, (d_in, d_out), for a canonical MXU feed."""
    keys = jax.random.split(rng, 4)

    def lin(k, d_in, d_out):
        stdv = 1.0 / math.sqrt(d_in)
        w = jax.random.uniform(k, (d_in, d_out), jnp.float32, -stdv, stdv)
        b = jnp.zeros((d_out,), jnp.float32)
        return w, b

    wq_w, wq_b = lin(keys[0], d_key, d_key)
    wk_w, wk_b = lin(keys[1], d_key, d_key)
    wv_w, wv_b = lin(keys[2], d_value, d_value)
    wo_w, wo_b = lin(keys[3], d_value, d_key)
    return dict(wq_w=wq_w, wq_b=wq_b, wk_w=wk_w, wk_b=wk_b,
                wv_w=wv_w, wv_b=wv_b, wo_w=wo_w, wo_b=wo_b)


def cast_weights(params, dtype):
    """One-time weight cast for the bf16 compute path (biases stay f32)."""
    return {name: (p.astype(dtype) if name.endswith("_w") else p)
            for name, p in params.items()}


# ---------------------------------------------------------------------------
# Pure-JAX reference for verification
# ---------------------------------------------------------------------------

def reference_forward(params, query, key, value, n_heads):
    q = query @ params["wq_w"] + params["wq_b"]
    k = key @ params["wk_w"] + params["wk_b"]
    v = value @ params["wv_w"] + params["wv_b"]
    B, Tq, D = q.shape
    _, Tk, _ = k.shape
    N, Dh = n_heads, D // n_heads
    sh = lambda x: x.reshape(B, x.shape[1], N, Dh).transpose(0, 2, 1, 3).reshape(
        B * N, x.shape[1], Dh)
    qh, kh, vh = sh(q), sh(k), sh(v)
    logits = jnp.einsum("bqd,bkd->bqk", qh, kh) / math.sqrt(D)
    p = jax.nn.softmax(logits, axis=-1)
    oh = jnp.einsum("bqk,bkd->bqd", p, vh)
    out = oh.reshape(B, N, Tq, Dh).transpose(0, 2, 1, 3).reshape(B, Tq, D)
    return out @ params["wo_w"] + params["wo_b"]


if __name__ == "__main__":
    B, Tq, Tk, D, N = 2, 8, 8, 32, 4  # d_key = d_value = D

    root = jax.random.PRNGKey(0)
    k_params, k_q, k_k, k_v = jax.random.split(root, 4)

    params = init_params(k_params, D, D)
    query = jax.random.normal(k_q, (B, Tq, D), jnp.float32)
    key = jax.random.normal(k_k, (B, Tk, D), jnp.float32)
    value = jax.random.normal(k_v, (B, Tk, D), jnp.float32)

    ref = reference_forward(params, query, key, value, N)

    # f32 path (tight-ish check vs reference; exact softmax divide in-kernel).
    out = multihead2_forward(params, query, key, value, N)
    out = jax.block_until_ready(out)
    assert out.shape == (B, Tq, D), out.shape
    assert jnp.allclose(out, ref, atol=2e-3, rtol=2e-3), "mismatch vs reference (f32)"

    # bf16 storage/matmul path (f32 accumulation): weights pre-cast once, q/k/v and
    # attention output stored bf16 — halves attention HBM traffic and K/V VMEM use.
    params_bf16 = cast_weights(params, jnp.bfloat16)
    out_bf16 = multihead2_forward(params_bf16, query, key, value, N,
                                  compute_dtype=jnp.bfloat16)
    out_bf16 = jax.block_until_ready(out_bf16)
    assert out_bf16.shape == (B, Tq, D)
    assert out_bf16.dtype == query.dtype
    assert bool(jnp.all(jnp.isfinite(out_bf16)))
    assert jnp.allclose(out_bf16, ref, atol=1.5e-1, rtol=1.5e-1), "mismatch (bf16 path)"

    print("KERNEL_OK")
</pallas_src>

<mosaic_0001>
module attributes {stable_mosaic.version = 11 : i64} {
  func.func @_linear_kernel(%arg0: i32, %arg1: i32, %arg2: i32, %arg3: memref<16x32xf32, #tpu.memory_space<vmem>>, %arg4: memref<32x32xf32, #tpu.memory_space<vmem>>, %arg5: memref<1x32xf32, #tpu.memory_space<vmem>>, %arg6: memref<16x32xf32, #tpu.memory_space<vmem>>, %arg7: memref<16x32xf32, #tpu.memory_space<vmem>>) attributes {dimension_semantics = [#tpu.dimension_semantics<parallel>, #tpu.dimension_semantics<parallel>, #tpu.dimension_semantics<arbitrary>], iteration_bounds = array<i64: 1, 1, 1>, scalar_prefetch = 0 : i64, scratch_operands = 1 : i64, tpu.core_type = #tpu.core_type<tc>, window_params = [{transform_indices = @transform_0, window_bounds = array<i64: 16, 32>}, {transform_indices = @transform_1, window_bounds = array<i64: 32, 32>}, {transform_indices = @transform_2, window_bounds = array<i64: 1, 32>}, {transform_indices = @transform_3, window_bounds = array<i64: 16, 32>}]} {
    %c0_i32 = arith.constant 0 : i32
    %0 = arith.cmpi eq, %arg2, %c0_i32 : i32
    %1 = arith.extui %0 : i1 to i32
    %c0_i32_0 = arith.constant 0 : i32
    %2 = arith.cmpi ne, %1, %c0_i32_0 : i32
    scf.if %2 {
      %cst_10 = arith.constant 0.000000e+00 : f32
      %12 = vector.broadcast %cst_10 : f32 to vector<16x32xf32>
      %c0_11 = arith.constant 0 : index
      %c0_12 = arith.constant 0 : index
      %13 = vector.load %arg7[%c0_11, %c0_12] : memref<16x32xf32, #tpu.memory_space<vmem>>, vector<16x32xf32>
      tpu.vector_store %arg7[%c0_11, %c0_12], %12 {strides = array<i32>} : memref<16x32xf32, #tpu.memory_space<vmem>>, vector<16x32xf32>,
    } else {
    }
    %c0 = arith.constant 0 : index
    %c0_1 = arith.constant 0 : index
    %3 = vector.load %arg3[%c0, %c0_1] : memref<16x32xf32, #tpu.memory_space<vmem>>, vector<16x32xf32>
    %c0_2 = arith.constant 0 : index
    %c0_3 = arith.constant 0 : index
    %4 = vector.load %arg4[%c0_2, %c0_3] : memref<32x32xf32, #tpu.memory_space<vmem>>, vector<32x32xf32>
    %c0_4 = arith.constant 0 : index
    %c0_5 = arith.constant 0 : index
    %5 = vector.load %arg7[%c0_4, %c0_5] : memref<16x32xf32, #tpu.memory_space<vmem>>, vector<16x32xf32>
    %cst = arith.constant dense<0.000000e+00> : vector<16x32xf32>
    %6 = tpu.matmul %3, %4, %cst {dimension_numbers = #tpu.dot_dimension_numbers<[1], [0], [0], [1], [0, 0, 1, 1], [], []>} : vector<16x32xf32>, vector<32x32xf32>, vector<16x32xf32> -> vector<16x32xf32>
    %7 = arith.addf %5, %6 : vector<16x32xf32>
    %c0_6 = arith.constant 0 : index
    %c0_7 = arith.constant 0 : index
    %8 = vector.load %arg7[%c0_6, %c0_7] : memref<16x32xf32, #tpu.memory_space<vmem>>, vector<16x32xf32>
    tpu.vector_store %arg7[%c0_6, %c0_7], %7 {strides = array<i32>} : memref<16x32xf32, #tpu.memory_space<vmem>>, vector<16x32xf32>,
    %c0_i32_8 = arith.constant 0 : i32
    %9 = arith.cmpi eq, %arg2, %c0_i32_8 : i32
    %10 = arith.extui %9 : i1 to i32
    %c0_i32_9 = arith.constant 0 : i32
    %11 = arith.cmpi ne, %10, %c0_i32_9 : i32
    scf.if %11 {
      %c0_10 = arith.constant 0 : index
      %c0_11 = arith.constant 0 : index
      %12 = vector.load %arg7[%c0_10, %c0_11] : memref<16x32xf32, #tpu.memory_space<vmem>>, vector<16x32xf32>
      %c0_12 = arith.constant 0 : index
      %c0_13 = arith.constant 0 : index
      %13 = vector.load %arg5[%c0_12, %c0_13] : memref<1x32xf32, #tpu.memory_space<vmem>>, vector<1x32xf32>
      %14 = vector.broadcast %13 : vector<1x32xf32> to vector<16x32xf32>
      %15 = arith.addf %12, %14 : vector<16x32xf32>
      %c0_14 = arith.constant 0 : index
      %c0_15 = arith.constant 0 : index
      %16 = vector.load %arg6[%c0_14, %c0_15] : memref<16x32xf32, #tpu.memory_space<vmem>>, vector<16x32xf32>
      tpu.vector_store %arg6[%c0_14, %c0_15], %15 {strides = array<i32>} : memref<16x32xf32, #tpu.memory_space<vmem>>, vector<16x32xf32>,
    } else {
    }
    return
  }
  func.func @transform_0(%arg0: i32, %arg1: i32, %arg2: i32) -> (i32, i32) {
    %c0_i32 = arith.constant 0 : i32
    return %arg0, %arg2 : i32, i32
  }
  func.func @transform_1(%arg0: i32, %arg1: i32, %arg2: i32) -> (i32, i32) {
    %c0_i32 = arith.constant 0 : i32
    return %arg2, %arg1 : i32, i32
  }
  func.func @transform_2(%arg0: i32, %arg1: i32, %arg2: i32) -> (i32, i32) {
    %c0_i32 = arith.constant 0 : i32
    %c0_i32_0 = arith.constant 0 : i32
    return %c0_i32, %arg1 : i32, i32
  }
  func.func @transform_3(%arg0: i32, %arg1: i32, %arg2: i32) -> (i32, i32) {
    %c0_i32 = arith.constant 0 : i32
    return %arg0, %arg1 : i32, i32
  }
}

</mosaic_0001>

<bundles_post_ra>
// kernel: tpu_custom_call.1
= control target key start
LH: loop header
LB: loop body
LE: loop exit
PB: predicated region body
PF: predicated region fallthrough
CT: control target
= control target key end

     0   :  { %8 = vsyncpa [#allocation4], 0  ;;  %s325_s0 = inlined_call_operand.hbm [shape: f32[16,32], index: 0, kind: input, shape index: {}]   ;;  %s326_s1 = inlined_call_operand.hbm [shape: f32[32,32], index: 1, kind: input, shape index: {}]   ;;  %s327_s2 = inlined_call_operand.vmem [shape: f32[1,32], index: 2, kind: input, shape index: {}]   ;;  %s328_s3 = inlined_call_operand.hbm [shape: f32[16,32], index: 3, kind: output, shape index: {}]  }
   0x1   :  { %9 = vsyncpa [#allocation7], 0 }
   0x2   :  { %10 = vsyncpa [#allocation5], 0  ;;  %s270_s12 = smov [#allocation3]  }
   0x3   :  { %s16_s13 = sshll.u32 %s270_s12, 4  ;;  %s17_s13 = int_to_ptr.vmem [resolvable:$true] %s16_s13 }
   0x4   :  { %s212_s14 = scalar_lea.vmem %s17_s13, 256  ;;  %p217_p1 = scmp.lt.s32.totalorder %s17_s13, %s17_s13 }
   0x5   :  { %p213_p0 = scmp.ne.s32.totalorder %s17_s13, %s212_s14  ;;  %p218_p2 = scmp.lt.s32.totalorder %s212_s14, %s212_s14 }
   0x7   :  { %p219_p3 = por %p218_p2, %p217_p1 }
   0x9   :  { %p220_p4 = pnand %p219_p3, %p213_p0 }
   0xb   :  { %223 = shalt.err (!%p220_p4)
}
   0xc   :  { %s271_s15 = smov 128   ;;  %s272_s16 = smov 8  }
   0xd   :  { %22 = dma.hbm_to_vmem [thread:$0]  %s325_s0, 256, %s17_s13, [#allocation4], %s271_s15, %s271_s15, %s272_s16  }
   0xe   :  { %s273_s19 = smov [#allocation6]  }
   0xf   :  { %s28_s20 = sshll.u32 %s273_s19, 4  ;;  %s29_s20 = int_to_ptr.vmem [resolvable:$true] %s28_s20 }
  0x10   :  { %s232_s21 = scalar_lea.vmem %s29_s20, 512  ;;  %p237_p6 = scmp.lt.s32.totalorder %s29_s20, %s29_s20 }
  0x11   :  { %p233_p5 = scmp.ne.s32.totalorder %s29_s20, %s232_s21  ;;  %p238_p7 = scmp.lt.s32.totalorder %s232_s21, %s232_s21 }
  0x13   :  { %p239_p8 = por %p238_p7, %p237_p6 }
  0x15   :  { %p240_p9 = pnand %p239_p8, %p233_p5 }
  0x17   :  { %243 = shalt.err (!%p240_p9)
}
  0x18   :  { %34 = dma.hbm_to_vmem [thread:$0]  %s326_s1, 512, %s29_s20, [#allocation7], %s271_s15, %s271_s15, %s272_s16  }
  0x19   :  { %264 = dma.done.wait [#allocation4], 256  }
  0x1a   :  { %265 = vsyncadd [#allocation4], 4294967040 }
  0x1b   :  { %266 = dma.done.wait [#allocation7], 512  }
  0x1c   :  { %267 = vsyncadd [#allocation7], 4294966784  ;;  %vm47_vm0 = vcmask 261120   ;;  %v274_v0 = vmov 0.0   ;;  %v55_v1 = vld [vmem:[#allocation6 + $0x18] sm:$0xff]  ;;  %v54_v2 = vld [vmem:[#allocation6 + $0x10] sm:$0xff] }
  0x1d   :  { %49 = vst.msk [vmem:[#allocation2 + $0x8] sm:$0xff] %vm47_vm0, %v274_v0  ;;  %48 = vst.msk [vmem:[#allocation2] sm:$0xff] %vm47_vm0, %v274_v0  ;;  %187 = vmatprep.subr.mxu0 %v55_v1  ;;  %v50_v3 = vld [vmem:[#allocation3] sm:$0xff]  ;;  %v53_v4 = vld [vmem:[#allocation6 + $0x8] sm:$0xff]  ;;  %s275_s24 = smov [#allocation8]  }
  0x1e   :  { %188 = vmatpush3.msra.mxu0 %v55_v1  ;;  %195 = vmatprep.mubr.msk.f32.mxu0 %vm47_vm0, %v50_v3  ;;  %v52_v5 = vld [vmem:[#allocation6] sm:$0xff]  ;;  %v51_v6 = vld [vmem:[#allocation3 + $0x8] sm:$0xff]  ;;  %s165_s25 = sshll.u32 %s275_s24, 4  ;;  %s166_s25 = int_to_ptr.vmem [resolvable:$true] %s165_s25 }
  0x1f   :  { %189 = vmatprep.subr.mxu0 %v54_v2  ;;  %v180_v13 = vld [vmem:[%s327_s2] ss:$0 sm:$0xff]  ;;  %s244_s26 = scalar_lea.vmem %s166_s25, 256  ;;  %p249_p11 = scmp.lt.s32.totalorder %s166_s25, %s166_s25 }
  0x20   :  { %190 = vmatpush3.msra.mxu0 %v54_v2  ;;  %p245_p10 = scmp.ne.s32.totalorder %s166_s25, %s244_s26  ;;  %p250_p12 = scmp.lt.s32.totalorder %s244_s26, %s244_s26 }
  0x21   :  { %191 = vmatprep.subr.mxu0 %v53_v4 }
  0x22   :  { %192 = vmatpush3.msra.mxu0 %v53_v4  ;;  %p251_p13 = por %p250_p12, %p249_p11 }
  0x23   :  { %193 = vmatprep.subr.mxu0 %v52_v5 }
  0x24   :  { %194 = vmatpush3.msra.mxu0 %v52_v5  ;;  %v57_v7 = vld [vmem:[#allocation2 + $0x8] sm:$0xff]  ;;  %v56_v9 = vld [vmem:[#allocation2] sm:$0xff]  ;;  %p252_p0 = pnand %p251_p13, %p245_p10 }
  0x25   :  { %196 = vmatmul.mubr.msk.f32.vlgmr.msra.gmra.mxu0 %vm47_vm0, %v51_v6 }
  0xe5   :  { %v197_v8 = vpop.f32.mrf.mxu0 }
  0xe6   :  { %v141_v10 = vadd.f32 %v197_v8, %v57_v7 }
  0xe7   :  { %v131_v11 = vpop.f32.mrf.mxu0 }
  0xe8   :  { %143 = vst.msk [vmem:[#allocation2 + $0x8] sm:$0xff] %vm47_vm0, %v141_v10  ;;  %v140_v12 = vadd.f32 %v131_v11, %v56_v9 }
  0xea   :  { %142 = vst.msk [vmem:[#allocation2] sm:$0xff] %vm47_vm0, %v140_v12 }
  0xef   :  { %v148_v14 = vld [vmem:[#allocation2 + $0x8] sm:$0xff] }
  0xf0   :  { %v157_v15 = vadd.f32 %v180_v13, %v148_v14 }
  0xf1   :  { %v147_v16 = vld [vmem:[#allocation2] sm:$0xff] }
  0xf2   :  { %v156_v17 = vadd.f32 %v180_v13, %v147_v16  ;;  %159 = vst.msk [vmem:[#allocation8 + $0x8] sm:$0xff] %vm47_vm0, %v157_v15 }
  0xf4   :  { %158 = vst.msk [vmem:[#allocation8] sm:$0xff] %vm47_vm0, %v156_v17 }
  0xf5   :  { %255 = shalt.err (!%p252_p0)
}
  0xf6   :  { %171 = dma.vmem_to_hbm [thread:$0]  %s166_s25, 256, %s328_s3, [#allocation5], %s271_s15, %s271_s15, %s272_s16  }
  0xf7   :  { %268 = dma.done.wait [#allocation5], 256  }
  0xf8   :  { %269 = vsyncadd [#allocation5], 4294967040 }
  0xf9   :  { %175 = vsyncpa [#allocation4], 1 }
  0xfa   :  { %176 = vsyncpa [#allocation7], 1 }
  0xfb   :  { %177 = vsyncpa [#allocation5], 1 }

</bundles_post_ra>
